<compile_context>
chip_gen: v7x
topology: tpu7x:2x2x1
jax: 0.10.0
libtpu: 0.0.40
codegen_flags: <defaults>
</compile_context>

<pallas_src>
import functools

import jax
import jax.numpy as jnp
from jax.experimental import pallas as pl
from jax.experimental.pallas import tpu as pltpu


def _round_up(x, m):
    return (x + m - 1) // m * m


def _pick_k(height, width, lane_tile):
    """Largest k with k | height, (width*k) % 128 == 0 and width*k <= lane_tile.

    k image rows are packed into one 128-aligned lane row of TL = k*width lanes,
    so the (B,1,H,W) -> (B,1,rows,TL) view is a free reshape (no pad, no copy).
    """
    best = None
    kmax = max(1, lane_tile // width)
    for k in range(1, kmax + 1):
        if height % k == 0 and (width * k) % 128 == 0:
            best = k
    return best


def _pick_ts(rows, cap):
    """Largest sublane tile <= cap that is a multiple of 8 and divides `rows`
    (or `rows` itself when it already fits -- full-dim blocks are always legal)."""
    if rows <= cap:
        return rows
    for ts in range(cap - cap % 8, 7, -8):
        if rows % ts == 0:
            return ts
    # TODO(synk): ragged `rows` with no clean divisor -> single full-height block;
    # fine for realistic image heights, revisit if rows is huge *and* prime.
    return rows


def _backproject_kernel(invk_ref, depth_ref, out_ref, *, width, rows_per_block_row):
    """One (batch, row-tile) grid step.

    invk_ref : SMEM (B, 16)        row-major flattened 4x4 inverse intrinsics.
    depth_ref: VMEM (1, 1, TS, TL) depth tile; each lane row packs `rows_per_block_row`
                                   image rows of `width` pixels (TL = k * width,
                                   or a zero-padded width on the fallback path).
    out_ref  : VMEM (1, C, TS, TL) output rows [X, Y, Z (, 1)] for this tile.
    """
    b = pl.program_id(0)
    t = pl.program_id(1)
    ts, tl = depth_ref.shape[2], depth_ref.shape[3]
    k = rows_per_block_row

    # 3x3 block of inv_K as scalars straight from SMEM (broadcast on the VPU).
    k00 = invk_ref[b, 0]
    k01 = invk_ref[b, 1]
    k02 = invk_ref[b, 2]
    k10 = invk_ref[b, 4]
    k11 = invk_ref[b, 5]
    k12 = invk_ref[b, 6]
    k20 = invk_ref[b, 8]
    k21 = invk_ref[b, 9]
    k22 = invk_ref[b, 10]

    depth = depth_ref[0, 0]                                    # (TS, TL) f32

    # Pixel coordinates generated on-chip from 2-D iotas (never streamed from HBM).
    row_i = jax.lax.broadcasted_iota(jnp.int32, (ts, tl), 0)
    col_i = jax.lax.broadcasted_iota(jnp.int32, (ts, tl), 1)
    blk_row = (t * ts + row_i).astype(jnp.float32)             # global lane-row index
    colf = col_i.astype(jnp.float32)

    if k == 1:
        # One image row per lane row (native width, possibly right-padded): no divide.
        x = colf
        y = blk_row
    else:
        # k image rows packed per lane row. floor((col+0.5)/W) == col // W exactly
        # in f32 because col < TL < 2^23 and the 0.5 margin dominates the 0.5-ulp
        # division error -- no exactness cliff for any image size.
        w = jnp.float32(width)
        sub = jnp.floor((colf + 0.5) / w)                      # col // W
        x = colf - sub * w                                     # col %  W
        y = blk_row * jnp.float32(k) + sub

    # cam = depth * (inv_K[:3,:3] @ [x, y, 1]) as pure VPU FMAs, stored row by row.
    out_ref[0, 0, :, :] = depth * (k00 * x + k01 * y + k02)
    out_ref[0, 1, :, :] = depth * (k10 * x + k11 * y + k12)
    out_ref[0, 2, :, :] = depth * (k20 * x + k21 * y + k22)
    if out_ref.shape[1] == 4:
        # Constant homogeneous row, required when the caller wants the materialized
        # (B,4,H*W) result of the PyTorch forward (cheaper than 3-row out + concat).
        out_ref[0, 3, :, :] = jnp.ones((ts, tl), jnp.float32)


def backproject_depth(depth, inv_K, *, lane_tile=1024, sublane_tile=256,
                      block_vmem_budget=6 * 1024 * 1024, emit_ones=True):
    """depth: (B, 1, H, W) f32, inv_K: (B, 4, 4) -> (B, 4, H*W) f32
    (or (B, 3, H*W) when emit_ones=False, for consumers that fuse the ones row)."""
    assert sublane_tile >= 8 and sublane_tile % 8 == 0
    B, _, H, W = depth.shape
    HW = H * W
    depth = depth.astype(jnp.float32)
    invk_flat = inv_K.reshape(B, 16).astype(jnp.float32)
    C = 4 if emit_ones else 3

    # ---- tile plan: free reshape to (B, 1, rows, TL) with TL = k*W when possible ----
    k = _pick_k(H, W, lane_tile)
    pad_w = 0
    if k is not None:
        TL = W * k
        rows = H // k
        depth_view = depth.reshape(B, 1, rows, TL)             # pure view, no copy
    else:
        # Rare fallback: no 128-aligned multiple of W divides the image.
        # Pad the width to a multiple of 128 and slice the columns off at the end.
        k = 1
        TL = _round_up(W, 128)
        pad_w = TL - W
        rows = H
        depth_view = jnp.pad(depth, ((0, 0), (0, 0), (0, 0), (0, pad_w)))

    # Sublane tile: as large as possible, bounded by `sublane_tile` and a VMEM
    # budget for one (input + output) block set (double-buffering doubles it again).
    bytes_per_sublane = (C + 1) * TL * 4
    cap = min(sublane_tile, max(8, (block_vmem_budget // bytes_per_sublane) // 8 * 8))
    TS = _pick_ts(rows, cap)

    # v7x has 2 TensorCores: make sure this mem-bound kernel has >= 2 parallel steps.
    if B * (rows // TS) < 2:
        half = rows // 2
        for ts in range(half - half % 8, 7, -8):
            if rows % ts == 0:
                TS = ts
                break

    grid = (B, rows // TS)

    kernel = functools.partial(_backproject_kernel, width=W, rows_per_block_row=k)

    out = pl.pallas_call(
        kernel,
        out_shape=jax.ShapeDtypeStruct((B, C, rows, TL), jnp.float32),
        grid_spec=pltpu.PrefetchScalarGridSpec(
            num_scalar_prefetch=0,
            grid=grid,
            in_specs=[
                # Whole inv_K table resident in SMEM for every grid step.
                pl.BlockSpec(memory_space=pltpu.MemorySpace.SMEM),
                pl.BlockSpec((1, 1, TS, TL), lambda b, t: (b, 0, t, 0)),
            ],
            out_specs=pl.BlockSpec((1, C, TS, TL), lambda b, t: (b, 0, t, 0)),
        ),
        compiler_params=pltpu.CompilerParams(
            dimension_semantics=("parallel", "parallel"),
        ),
    )(invk_flat, depth_view)

    if pad_w:
        out = out[:, :, :, :W]                                 # fallback path only
    return out.reshape(B, C, HW)


def _reference(depth, inv_K):
    """Pure-JAX reference matching the PyTorch forward exactly."""
    B, _, H, W = depth.shape
    HW = H * W
    xs, ys = jnp.meshgrid(
        jnp.arange(W, dtype=jnp.float32),
        jnp.arange(H, dtype=jnp.float32),
        indexing="xy",
    )
    pix = jnp.stack([xs.reshape(-1), ys.reshape(-1), jnp.ones((HW,), jnp.float32)], 0)
    pix = jnp.broadcast_to(pix[None], (B, 3, HW))
    cam = jnp.matmul(inv_K[:, :3, :3], pix, precision=jax.lax.Precision.HIGHEST)
    cam = depth.reshape(B, 1, HW) * cam
    return jnp.concatenate([cam, jnp.ones((B, 1, HW), jnp.float32)], axis=1)


if __name__ == "__main__":
    key = jax.random.PRNGKey(0)
    ok = True

    # (B, H, W) — covers: packed lane rows (k>1), non-pow2 packing, native rows with
    # megacore split (k=1, grid split to 2 tiles), and the width-pad fallback.
    cases = [
        (2, 16, 16),
        (2, 20, 64),
        (1, 16, 1024),
        (1, 5, 10),
    ]
    for B, H, W in cases:
        key, kd, kk = jax.random.split(key, 3)
        depth = jax.random.uniform(kd, (B, 1, H, W), dtype=jnp.float32) * 10.0 + 0.1
        inv_K = jax.random.normal(kk, (B, 4, 4), dtype=jnp.float32)

        out = jax.block_until_ready(backproject_depth(depth, inv_K))
        ref = _reference(depth, inv_K)

        assert out.shape == (B, 4, H * W)
        if not jnp.allclose(out, ref, rtol=1e-4, atol=1e-2):
            ok = False

    # 3-row variant (homogeneous row dropped, for fusion with downstream consumers).
    B, H, W = 2, 16, 16
    key, kd, kk = jax.random.split(key, 3)
    depth = jax.random.uniform(kd, (B, 1, H, W), dtype=jnp.float32) * 10.0 + 0.1
    inv_K = jax.random.normal(kk, (B, 4, 4), dtype=jnp.float32)
    out3 = jax.block_until_ready(backproject_depth(depth, inv_K, emit_ones=False))
    ref3 = _reference(depth, inv_K)[:, :3]
    if out3.shape != (B, 3, H * W) or not jnp.allclose(out3, ref3, rtol=1e-4, atol=1e-2):
        ok = False

    if ok:
        print("KERNEL_OK")
</pallas_src>

<mosaic_0001>
module attributes {stable_mosaic.version = 11 : i64} {
  func.func @_backproject_kernel(%arg0: i32, %arg1: i32, %arg2: memref<2x16xf32, #tpu.memory_space<smem>>, %arg3: memref<1x1x1x256xf32, #tpu.memory_space<vmem>>, %arg4: memref<1x4x1x256xf32, #tpu.memory_space<vmem>>) attributes {dimension_semantics = [#tpu.dimension_semantics<parallel>, #tpu.dimension_semantics<parallel>], iteration_bounds = array<i64: 2, 1>, scalar_prefetch = 0 : i64, scratch_operands = 0 : i64, tpu.core_type = #tpu.core_type<tc>, window_params = [{transform_indices = @transform_0, window_bounds = array<i64: 2, 16>}, {transform_indices = @transform_1, window_bounds = array<i64: 1, 1, 1, 256>}, {transform_indices = @transform_2, window_bounds = array<i64: 1, 4, 1, 256>}]} {
    %0 = arith.index_cast %arg0 : i32 to index
    %c0 = arith.constant 0 : index
    %1 = memref.load %arg2[%0, %c0] : memref<2x16xf32, #tpu.memory_space<smem>>
    %2 = arith.index_cast %arg0 : i32 to index
    %c1 = arith.constant 1 : index
    %3 = memref.load %arg2[%2, %c1] : memref<2x16xf32, #tpu.memory_space<smem>>
    %4 = arith.index_cast %arg0 : i32 to index
    %c2 = arith.constant 2 : index
    %5 = memref.load %arg2[%4, %c2] : memref<2x16xf32, #tpu.memory_space<smem>>
    %6 = arith.index_cast %arg0 : i32 to index
    %c4 = arith.constant 4 : index
    %7 = memref.load %arg2[%6, %c4] : memref<2x16xf32, #tpu.memory_space<smem>>
    %8 = arith.index_cast %arg0 : i32 to index
    %c5 = arith.constant 5 : index
    %9 = memref.load %arg2[%8, %c5] : memref<2x16xf32, #tpu.memory_space<smem>>
    %10 = arith.index_cast %arg0 : i32 to index
    %c6 = arith.constant 6 : index
    %11 = memref.load %arg2[%10, %c6] : memref<2x16xf32, #tpu.memory_space<smem>>
    %12 = arith.index_cast %arg0 : i32 to index
    %c8 = arith.constant 8 : index
    %13 = memref.load %arg2[%12, %c8] : memref<2x16xf32, #tpu.memory_space<smem>>
    %14 = arith.index_cast %arg0 : i32 to index
    %c9 = arith.constant 9 : index
    %15 = memref.load %arg2[%14, %c9] : memref<2x16xf32, #tpu.memory_space<smem>>
    %16 = arith.index_cast %arg0 : i32 to index
    %c10 = arith.constant 10 : index
    %17 = memref.load %arg2[%16, %c10] : memref<2x16xf32, #tpu.memory_space<smem>>
    %c0_0 = arith.constant 0 : index
    %c0_1 = arith.constant 0 : index
    %c0_2 = arith.constant 0 : index
    %c0_3 = arith.constant 0 : index
    %18 = vector.load %arg3[%c0_0, %c0_1, %c0_2, %c0_3] : memref<1x1x1x256xf32, #tpu.memory_space<vmem>>, vector<1x1x1x256xf32>
    %19 = vector.shape_cast %18 : vector<1x1x1x256xf32> to vector<1x256xf32>
    %20 = tpu.iota {dimensions = array<i32: 0>} : vector<1x256xi32>
    %21 = tpu.iota {dimensions = array<i32: 1>} : vector<1x256xi32>
    %c1_i32 = arith.constant 1 : i32
    %22 = arith.muli %arg1, %c1_i32 : i32
    %23 = vector.broadcast %22 : i32 to vector<1x256xi32>
    %24 = arith.addi %23, %20 : vector<1x256xi32>
    %25 = arith.sitofp %24 : vector<1x256xi32> to vector<1x256xf32>
    %26 = arith.sitofp %21 : vector<1x256xi32> to vector<1x256xf32>
    %cst = arith.constant 5.000000e-01 : f32
    %27 = vector.broadcast %cst : f32 to vector<1x256xf32>
    %28 = arith.addf %26, %27 : vector<1x256xf32>
    %cst_4 = arith.constant 1.600000e+01 : f32
    %29 = vector.broadcast %cst_4 : f32 to vector<1x256xf32>
    %30 = arith.divf %28, %29 : vector<1x256xf32>
    %31 = math.floor %30 : vector<1x256xf32>
    %cst_5 = arith.constant 1.600000e+01 : f32
    %32 = vector.broadcast %cst_5 : f32 to vector<1x256xf32>
    %33 = arith.mulf %31, %32 : vector<1x256xf32>
    %34 = arith.subf %26, %33 : vector<1x256xf32>
    %cst_6 = arith.constant 1.600000e+01 : f32
    %35 = vector.broadcast %cst_6 : f32 to vector<1x256xf32>
    %36 = arith.mulf %25, %35 : vector<1x256xf32>
    %37 = arith.addf %36, %31 : vector<1x256xf32>
    %38 = vector.broadcast %1 : f32 to vector<1x256xf32>
    %39 = arith.mulf %38, %34 : vector<1x256xf32>
    %40 = vector.broadcast %3 : f32 to vector<1x256xf32>
    %41 = arith.mulf %40, %37 : vector<1x256xf32>
    %42 = arith.addf %39, %41 : vector<1x256xf32>
    %43 = vector.broadcast %5 : f32 to vector<1x256xf32>
    %44 = arith.addf %42, %43 : vector<1x256xf32>
    %45 = arith.mulf %19, %44 : vector<1x256xf32>
    %c0_7 = arith.constant 0 : index
    %c0_8 = arith.constant 0 : index
    %c0_9 = arith.constant 0 : index
    %c0_10 = arith.constant 0 : index
    %46 = vector.load %arg4[%c0_7, %c0_8, %c0_9, %c0_10] : memref<1x4x1x256xf32, #tpu.memory_space<vmem>>, vector<1x1x1x256xf32>
    %47 = vector.shape_cast %46 : vector<1x1x1x256xf32> to vector<1x256xf32>
    %48 = vector.shape_cast %45 : vector<1x256xf32> to vector<1x1x1x256xf32>
    tpu.vector_store %arg4[%c0_7, %c0_8, %c0_9, %c0_10], %48 {strides = array<i32>} : memref<1x4x1x256xf32, #tpu.memory_space<vmem>>, vector<1x1x1x256xf32>,
    %49 = vector.broadcast %7 : f32 to vector<1x256xf32>
    %50 = arith.mulf %49, %34 : vector<1x256xf32>
    %51 = vector.broadcast %9 : f32 to vector<1x256xf32>
    %52 = arith.mulf %51, %37 : vector<1x256xf32>
    %53 = arith.addf %50, %52 : vector<1x256xf32>
    %54 = vector.broadcast %11 : f32 to vector<1x256xf32>
    %55 = arith.addf %53, %54 : vector<1x256xf32>
    %56 = arith.mulf %19, %55 : vector<1x256xf32>
    %c0_11 = arith.constant 0 : index
    %c1_12 = arith.constant 1 : index
    %c0_13 = arith.constant 0 : index
    %c0_14 = arith.constant 0 : index
    %57 = vector.load %arg4[%c0_11, %c1_12, %c0_13, %c0_14] : memref<1x4x1x256xf32, #tpu.memory_space<vmem>>, vector<1x1x1x256xf32>
    %58 = vector.shape_cast %57 : vector<1x1x1x256xf32> to vector<1x256xf32>
    %59 = vector.shape_cast %56 : vector<1x256xf32> to vector<1x1x1x256xf32>
    tpu.vector_store %arg4[%c0_11, %c1_12, %c0_13, %c0_14], %59 {strides = array<i32>} : memref<1x4x1x256xf32, #tpu.memory_space<vmem>>, vector<1x1x1x256xf32>,
    %60 = vector.broadcast %13 : f32 to vector<1x256xf32>
    %61 = arith.mulf %60, %34 : vector<1x256xf32>
    %62 = vector.broadcast %15 : f32 to vector<1x256xf32>
    %63 = arith.mulf %62, %37 : vector<1x256xf32>
    %64 = arith.addf %61, %63 : vector<1x256xf32>
    %65 = vector.broadcast %17 : f32 to vector<1x256xf32>
    %66 = arith.addf %64, %65 : vector<1x256xf32>
    %67 = arith.mulf %19, %66 : vector<1x256xf32>
    %c0_15 = arith.constant 0 : index
    %c2_16 = arith.constant 2 : index
    %c0_17 = arith.constant 0 : index
    %c0_18 = arith.constant 0 : index
    %68 = vector.load %arg4[%c0_15, %c2_16, %c0_17, %c0_18] : memref<1x4x1x256xf32, #tpu.memory_space<vmem>>, vector<1x1x1x256xf32>
    %69 = vector.shape_cast %68 : vector<1x1x1x256xf32> to vector<1x256xf32>
    %70 = vector.shape_cast %67 : vector<1x256xf32> to vector<1x1x1x256xf32>
    tpu.vector_store %arg4[%c0_15, %c2_16, %c0_17, %c0_18], %70 {strides = array<i32>} : memref<1x4x1x256xf32, #tpu.memory_space<vmem>>, vector<1x1x1x256xf32>,
    %cst_19 = arith.constant 1.000000e+00 : f32
    %71 = vector.broadcast %cst_19 : f32 to vector<1x256xf32>
    %c0_20 = arith.constant 0 : index
    %c3 = arith.constant 3 : index
    %c0_21 = arith.constant 0 : index
    %c0_22 = arith.constant 0 : index
    %72 = vector.load %arg4[%c0_20, %c3, %c0_21, %c0_22] : memref<1x4x1x256xf32, #tpu.memory_space<vmem>>, vector<1x1x1x256xf32>
    %73 = vector.shape_cast %72 : vector<1x1x1x256xf32> to vector<1x256xf32>
    %74 = vector.shape_cast %71 : vector<1x256xf32> to vector<1x1x1x256xf32>
    tpu.vector_store %arg4[%c0_20, %c3, %c0_21, %c0_22], %74 {strides = array<i32>} : memref<1x4x1x256xf32, #tpu.memory_space<vmem>>, vector<1x1x1x256xf32>,
    return
  }
  func.func @transform_0(%arg0: i32, %arg1: i32) -> (i32, i32) {
    %c0_i32 = arith.constant 0 : i32
    %c0_i32_0 = arith.constant 0 : i32
    %c0_i32_1 = arith.constant 0 : i32
    return %c0_i32, %c0_i32_0 : i32, i32
  }
  func.func @transform_1(%arg0: i32, %arg1: i32) -> (i32, i32, i32, i32) {
    %c0_i32 = arith.constant 0 : i32
    %c0_i32_0 = arith.constant 0 : i32
    %c0_i32_1 = arith.constant 0 : i32
    return %arg0, %c0_i32, %arg1, %c0_i32_0 : i32, i32, i32, i32
  }
  func.func @transform_2(%arg0: i32, %arg1: i32) -> (i32, i32, i32, i32) {
    %c0_i32 = arith.constant 0 : i32
    %c0_i32_0 = arith.constant 0 : i32
    %c0_i32_1 = arith.constant 0 : i32
    return %arg0, %c0_i32, %arg1, %c0_i32_0 : i32, i32, i32, i32
  }
}

</mosaic_0001>

<bundles_post_ra>
// kernel: tpu_custom_call.1
= control target key start
LH: loop header
LB: loop body
LE: loop exit
PB: predicated region body
PF: predicated region fallthrough
CT: control target
= control target key end

     0   :  { %7 = vsyncpa [#allocation5], 0  ;;  %s993_s0 = inlined_call_operand.hbm [shape: f32[2,16], index: 0, kind: input, shape index: {}]   ;;  %s994_s1 = inlined_call_operand.hbm [shape: f32[2,1,1,256], index: 1, kind: input, shape index: {}]   ;;  %s995_s2 = inlined_call_operand.hbm [shape: f32[2,4,1,256], index: 2, kind: output, shape index: {}]  }
   0x1   :  { %8 = vsyncpa [#allocation3], 0 }
   0x2   :  { %10 = vsyncpa [#allocation3 + $0x1], 0 }
   0x3   :  { %11 = vsyncpa [#allocation4], 0 }
   0x4   :  { %13 = vsyncpa [#allocation4 + $0x1], 0  ;;  %s702_s9 = smov 0   ;;  %s704_s10 = smov 0  }
   0x5   :  { %s706_s11 = smov 0   ;;  %s708_s12 = smov 0  }
   0x6   :  { %s710_s13 = smov 0   ;;  %s712_s14 = smov 0  }
   0x7 LB: > { %s449_s15 = sadd.s32 4294967295, %s678_s14   ;;  %s450_s16 = sadd.s32 4294967294, %s678_s14   ;;  %s678_s14 = sphi %s712_s14, %s19_s14   ;;  %s674_s13 = sphi %s710_s13, %s1021_s13   ;;  %s670_s12 = sphi %s708_s12, %s1020_s12   ;;  %s666_s11 = sphi %s706_s11, %s1019_s11   ;;  %s662_s10 = sphi %s704_s10, %s1018_s10   ;;  %s658_s9 = sphi %s702_s9, %s1017_s9  }
   0x8   : > { %p74_p0 = scmp.ne.s32.totalorder %s662_s10, %s658_s9  ;;  %p736_p1 = scmp.eq.s32.totalorder %s449_s15, 0 }
   0x9   : > { %p740_p2 = scmp.eq.s32.totalorder %s449_s15, 1  ;;  %p106_p3 = scmp.eq.s32.totalorder %s450_s16, 1 }
   0xa   : > { %s1000_s17 = scalar_select %p736_p1, 1, 0 }
   0xb   : > { %p746_p4 = por %p736_p1, %p74_p0  ;;  %p451_p5 = scmp.ge.s32.totalorder %s678_s14, 1 }
   0xc   : > { %p751_p6 = por %p106_p3, %p74_p0  ;;  %p113_p7 = scmp.lt.s32.totalorder %s678_s14, 3 }
   0xd   : > { %s1002_s19 = scalar_select %p746_p4, 1, 0 }
   0xe   : > { %s1003_s20 = scalar_select %p751_p6, 1, 0 }
   0xf   : > { %p756_p8 = pnand %p451_p5, %p113_p7  ;;  %s31_s22 = sadd.s32 1, %s674_s13 }
  0x10   : > { %p770_p12 = scmp.ge.s32.totalorder %s31_s22, 2  ;;  %s61_s25 = sadd.s32 1, %s666_s11 }
  0x11   : > { %p480_p10 = pneg %p756_p8  ;;  %p68_p13 = scmp.ne.s32.totalorder %s666_s11, %s662_s10 }
  0x12   : > { %p69_p0 = scmp.eq.s32.totalorder %s678_s14, 0  ;;  %s549_s28 = scalar_lea.hbm %s993_s0, 32 }
  0x13   : > { %p766_p11 = pnand %p480_p10, %p736_p1  ;;  %p550_p3 = scmp.ne.s32.totalorder %s993_s0, %s549_s28 }
  0x14   : > { %p556_p9 = scmp.lt.u32.totalorder %s549_s28, %s993_s0 }
  0x15   : > { %p551_p5 = pneg %p766_p11 }
  0x17   : > { %p552_p7 = pnand %p551_p5, %p550_p3 }
  0x19   : > { %p553_p10 = pneg %p552_p7 }
  0x1b   : > { %p558_p6 = pnand %p556_p9, %p553_p10 }
  0x1d   : > { %561 = shalt.err (!%p558_p6)
}
  0x1e   : > { %s680_s5 = smov [#allocation2]   ;;  %s1023_s22 = smov (%p770_p12, %s31_s22), 0 }
  0x1f   : > { %483 = dma.hbm_to_smem (!%p766_p11), %s993_s0, 32, %s680_s5, [#allocation5]  }
  0x20   : > { %p801_p6 = por %p69_p0, %p68_p13  ;;  %p810_p9 = por %p740_p2, %p68_p13 }
  0x21   : > { %s56_s16 = ssub.s32 %s674_s13, %s1023_s22  ;;  %p493_p3 = scmp.lt.s32.totalorder %s678_s14, 2 }
  0x22   : > { %s1008_s15 = scalar_select %p810_p9, 1, 0 }
  0x23   : > { %p59_p5 = scmp.eq.s32.totalorder %s56_s16, 0  ;;  %s135_s23 = sand.u32 1, %s666_s11  }
  0x24   : > { %s454_s24 = sshll.u32 %s135_s23, 1  ;;  %s470_s27 = sshll.u32 %s674_s13, 5 }
  0x25   : > { %s819_s26 = scalar_select %p59_p5, %s666_s11, %s61_s25  }
  0x26   : > { %s825_s30 = scalar_lea.hbm %s994_s1, %s470_s27  ;;  %s139_s18 = scalar_lea.vmem [#allocation6], %s454_s24 }
  0x27   : > { %s149_s3 = sshll.u32 %s139_s18, 4  ;;  %p831_p2 = pnand %p493_p3, %p801_p6  ;;  %s827_s3 = int_to_ptr.vmem [resolvable:$true] %s149_s3 }
  0x28   : > { %s136_s25 = scalar_lea.sflag [#allocation3], %s135_s23  ;;  %s562_s5 = scalar_lea.hbm %s825_s30, 32 }
  0x29   : > { %p563_p11 = scmp.ne.s32.totalorder %s825_s30, %s562_s5  ;;  %p564_p12 = pneg %p831_p2 }
  0x2a   : > { %s567_s16 = scalar_lea.hbm %s994_s1, 64  ;;  %p568_p7 = scmp.lt.u32.totalorder %s825_s30, %s994_s1 }
  0x2b   : > { %p565_p13 = pnand %p564_p12, %p563_p11  ;;  %p569_p10 = scmp.lt.u32.totalorder %s567_s16, %s562_s5 }
  0x2c   : > { %p571_p3 = scmp.lt.u32.totalorder %s562_s5, %s825_s30 }
  0x2d   : > { %p566_p0 = pneg %p565_p13  ;;  %p570_p6 = por %p569_p10, %p568_p7 }
  0x2f   : > { %p572_p5 = por %p571_p3, %p570_p6 }
  0x31   : > { %p573_p9 = pnand %p572_p5, %p566_p0 }
  0x33   : > { %576 = shalt.err (!%p573_p9)
}
  0x34   : > { %s577_s23 = scalar_lea.vmem %s827_s3, 32  ;;  %s681_s27 = smov [#allocation6]  }
  0x35   : > { %p578_p11 = scmp.ne.s32.totalorder %s827_s3, %s577_s23  ;;  %s582_s28 = sshll.u32 %s681_s27, 4  ;;  %s583_s28 = int_to_ptr.vmem [resolvable:$false] %s582_s28 }
  0x36   : > { %s584_s29 = scalar_lea.vmem %s583_s28, 64  ;;  %p585_p1 = scmp.lt.s32.totalorder %s827_s3, %s583_s28 }
  0x37   : > { %p580_p13 = pnand %p578_p11, %p564_p12  ;;  %p586_p7 = scmp.lt.s32.totalorder %s584_s29, %s577_s23 }
  0x39   : > { %p581_p4 = pneg %p580_p13  ;;  %p587_p10 = por %p586_p7, %p585_p1 }
  0x3b   : > { %p588_p6 = pnand %p587_p10, %p581_p4 }
  0x3d   : > { %591 = shalt.err (!%p588_p6)
}
  0x3e   : > { %487 = dma.hbm_to_vmem [thread:$0]  (!%p831_p2), %s825_s30, 32, %s827_s3, %s136_s25  }
  0x3f   : > { %158 = sbr.rel (%p756_p8) target bundleno = 125 (0x7d), region = 28  ;;  %p1010_p9 = scmp.ne.s32.totalorder (!%p756_p8), %s1000_s17, 0 }
  0x46   : > { %645 = dma.done.wait (%p1010_p9), [#allocation5], 32  }
  0x47   : > { %647 = vsyncadd (%p1010_p9), [#allocation5], 4294967264  ;;  %s867_s18 = sand.u32 1, %s662_s10   ;;  %p1011_p1 = scmp.ne.s32.totalorder %s1002_s19, 0 }
  0x48   : > { %s459_s5 = sshll.u32 %s867_s18, 1  ;;  %s165_s4 = scalar_lea.sflag [#allocation3], %s867_s18 }
  0x49   : > { %s871_s6 = scalar_lea.vmem [#allocation6], %s459_s5 }
  0x4a   : > { %649 = dma.done.wait (%p1011_p1), %s165_s4, 32  }
  0x4b   : > { %651 = vsyncadd (%p1011_p1), %s165_s4, 4294967264 }
  0x4c   : > { %173 = sfence }
  0x4d   : > { %s460_s17 = sshll.u32 %s867_s18, 3  ;;  %s879_s21 = sshll.u32 %s670_s12, 7  ;;  %v209_v0 = vlaneseq  ;;  %v682_v4 = vmov 1.0   ;;  %v683_v13 = vmov 1966171168  }
  0x4e   : > { %s192_s30 = sadd.s32 1, %s879_s21  ;;  %s194_s3 = sadd.s32 2, %s879_s21  ;;  %v248_v14 = vunpack.c.l.s4 %v683_v13 }
  0x4f   : > { %v883_v1 = vshrl.u32 %v209_v0, 7  ;;  %v212_v2 = vand.u32 127, %v209_v0  ;;  %vm885_vm0 = vcmp.lt.s32.totalorder %v209_v0, 256  ;;  %s889_s19 = sld [smem:[#allocation2 + %s192_s30]]  ;;  %s891_s12 = scalar_lea.vmem [#allocation7], %s460_s17 }
  0x50   : > { %464 = vst.msk [vmem:[%s891_s12 + $0x6] sm:$0x3] %vm885_vm0, %v682_v4  ;;  %s897_s25 = sld [smem:[#allocation2 + %s879_s21]]  ;;  %s196_s7 = sadd.s32 4, %s879_s21  ;;  %v249_v21 = vunpack.c.0.s8 %v248_v14  ;;  %v208_v0 = vld [vmem:[%s871_s6] sm:$0x3] }
  0x51   : > { %v213_v5 = vadd.s32 128, %v212_v2  ;;  %v216_v6 = vcvt.s32.f32 %v883_v1  ;;  %v217_v7 = vcvt.s32.f32 %v212_v2  ;;  %s901_s16 = sld [smem:[#allocation2 + %s194_s3]]  ;;  %s198_s24 = sadd.s32 5, %s879_s21 }
  0x52   : > { %s903_s8 = sld [smem:[#allocation2 + %s196_s7]]  ;;  %s200_s23 = sadd.s32 6, %s879_s21  ;;  %v252_v56 = vsub.s32 %v249_v21, %v883_v1 }
  0x53   : > { %v218_v8 = vcvt.s32.f32 %v213_v5  ;;  %v219_v9 = vadd.f32 0.5, %v217_v7  ;;  %s907_s27 = sld [smem:[#allocation2 + %s198_s24]]  ;;  %v230_v12 = vmul.f32 16.0, %v216_v6  ;;  %s202_s29 = sadd.s32 8, %s879_s21 }
  0x54   : > { %s909_s28 = sld [smem:[#allocation2 + %s200_s23]]  ;;  %s204_s5 = sadd.s32 9, %s879_s21 }
  0x55   : > { %v220_v10 = vadd.f32 0.5, %v218_v8  ;;  %v222_v11 = vmul.f32 0.0625, %v219_v9  ;;  %s913_s4 = sld [smem:[#allocation2 + %s202_s29]]  ;;  %s206_s30 = sadd.s32 10, %s879_s21  ;;  %v236_v17 = vstv %s889_s19 }
  0x56   : > { %s205_s17 = sld [smem:[#allocation2 + %s204_s5]]  ;;  %v233_v22 = vstv %s897_s25  ;;  %s350_s19 = sshll.u32 %s891_s12, 4  ;;  %s929_s19 = int_to_ptr.vmem [resolvable:$true] %s350_s19 }
  0x57   : > { %v223_v15 = vmul.f32 0.0625, %v220_v10  ;;  %v224_v16 = vfloor.f32 %v222_v11  ;;  %s917_s3 = sld [smem:[#allocation2 + %s206_s30]]  ;;  %v241_v23 = vstv %s901_s16  ;;  %s935_s16 = scalar_lea.hbm %s995_s2, %s879_s21 }
  0x58   : > { %v268_v24 = vstv %s903_s8  ;;  %s335_s6 = scalar_lea.sflag [#allocation4], %s867_s18  ;;  %s592_s8 = scalar_lea.vmem %s929_s19, 128 }
  0x59   : > { %v225_v18 = vfloor.f32 %v223_v15  ;;  %v226_v19 = vmul.f32 16.0, %v224_v16  ;;  %v231_v20 = vadd.f32 %v230_v12, %v224_v16  ;;  %v271_v25 = vstv %s907_s27  ;;  %p593_p4 = scmp.ne.s32.totalorder %s929_s19, %s592_s8  ;;  %p1014_p8 = scmp.ne.s32.totalorder %s1008_s15, 0 }
  0x5a   : > { %v276_v31 = vstv %s909_s28  ;;  %s684_s24 = smov [#allocation7]  }
  0x5b   : > { %v227_v26 = vmul.f32 16.0, %v225_v18  ;;  %v228_v27 = vsub.f32 %v217_v7, %v226_v19  ;;  %v232_v28 = vadd.f32 %v230_v12, %v225_v18  ;;  %v237_v29 = vmul.f32 %v236_v17, %v231_v20  ;;  %p594_p2 = pnand %p593_p4, %p1014_p8  ;;  %s596_s23 = sshll.u32 %s684_s24, 4  ;;  %s597_s23 = int_to_ptr.vmem [resolvable:$false] %s596_s23 }
  0x5c   : > { %v272_v30 = vmul.f32 %v271_v25, %v231_v20  ;;  %v300_v32 = vstv %s913_s4  ;;  %v303_v33 = vstv %s205_s17  ;;  %s598_s21 = scalar_lea.vmem %s597_s23, 256  ;;  %p599_p0 = scmp.lt.s32.totalorder %s929_s19, %s597_s23 }
  0x5d   : > { %v229_v34 = vsub.f32 %v218_v8, %v227_v26  ;;  %v234_v35 = vmul.f32 %v233_v22, %v228_v27  ;;  %v238_v36 = vmul.f32 %v236_v17, %v232_v28  ;;  %v269_v37 = vmul.f32 %v268_v24, %v228_v27  ;;  %p595_p12 = pneg %p594_p2  ;;  %p600_p3 = scmp.lt.s32.totalorder %s598_s21, %s592_s8 }
  0x5e   : > { %v273_v38 = vmul.f32 %v271_v25, %v232_v28  ;;  %v301_v39 = vmul.f32 %v300_v32, %v228_v27  ;;  %v304_v40 = vmul.f32 %v303_v33, %v231_v20  ;;  %v305_v41 = vmul.f32 %v303_v33, %v232_v28 }
  0x5f   : > { %v235_v42 = vmul.f32 %v233_v22, %v229_v34  ;;  %v239_v43 = vadd.f32 %v237_v29, %v234_v35  ;;  %v270_v44 = vmul.f32 %v268_v24, %v229_v34  ;;  %v274_v45 = vadd.f32 %v272_v30, %v269_v37  ;;  %p601_p5 = por %p600_p3, %p599_p0 }
  0x60   : > { %v302_v46 = vmul.f32 %v300_v32, %v229_v34  ;;  %v306_v47 = vadd.f32 %v304_v40, %v301_v39  ;;  %v308_v48 = vstv %s917_s3 }
  0x61   : > { %v240_v49 = vadd.f32 %v238_v36, %v235_v42  ;;  %v242_v50 = vadd.f32 %v241_v23, %v239_v43  ;;  %v275_v51 = vadd.f32 %v273_v38, %v270_v44  ;;  %v277_v52 = vadd.f32 %v276_v31, %v274_v45  ;;  %p602_p11 = pnand %p601_p5, %p595_p12 }
  0x62   : > { %v307_v53 = vadd.f32 %v305_v41, %v302_v46  ;;  %v309_v54 = vadd.f32 %v308_v48, %v306_v47 }
  0x63   : > { %v243_v55 = vadd.f32 %v241_v23, %v240_v49  ;;  %v278_v57 = vadd.f32 %v276_v31, %v275_v51 }
  0x64   : > { %v310_v58 = vadd.f32 %v308_v48, %v307_v53 }
  0x65   : > { %v246_v59 = vcombine.low %v242_v50, %v243_v55  ;;  %v281_v60 = vcombine.low %v277_v52, %v278_v57 }
  0x66   : > { %v313_v61 = vcombine.low %v309_v54, %v310_v58 }
  0x67   : > { %v253_v62 = vrot.slane %v246_v59, %v252_v56  ;;  %v288_v63 = vrot.slane %v281_v60, %v252_v56 }
  0x68   : > { %v320_v2 = vrot.slane %v313_v61, %v252_v56 }
  0x69   : > { %v260_v4 = vrot.slane %v253_v62, %v252_v56  ;;  %v295_v5 = vrot.slane %v288_v63, %v252_v56 }
  0x6a   : > { %v327_v1 = vrot.slane %v320_v2, %v252_v56 }
  0x6b   : > { %v262_v6 = vmul.f32 %v260_v4, %v208_v0  ;;  %v297_v7 = vmul.f32 %v295_v5, %v208_v0 }
  0x6c   : > { %v329_v8 = vmul.f32 %v327_v1, %v208_v0 }
  0x6d   : > { %267 = vst.msk [vmem:[%s891_s12] sm:$0x3] %vm885_vm0, %v262_v6  ;;  %462 = vst.msk [vmem:[%s891_s12 + $0x2] sm:$0x3] %vm885_vm0, %v297_v7 }
  0x6e   : > { %463 = vst.msk [vmem:[%s891_s12 + $0x4] sm:$0x3] %vm885_vm0, %v329_v8 }
  0x6f   : > { %605 = shalt.err (!%p602_p11)
}
  0x70   : > { %s606_s12 = scalar_lea.hbm %s935_s16, 128  ;;  %s610_s29 = scalar_lea.hbm %s995_s2, 256 }
  0x71   : > { %p607_p13 = scmp.ne.s32.totalorder %s935_s16, %s606_s12  ;;  %p611_p6 = scmp.lt.u32.totalorder %s935_s16, %s995_s2 }
  0x72   : > { %p612_p9 = scmp.lt.u32.totalorder %s610_s29, %s606_s12  ;;  %p614_p4 = scmp.lt.u32.totalorder %s606_s12, %s935_s16 }
  0x73   : > { %p608_p7 = pnand %p607_p13, %p1014_p8 }
  0x74   : > { %p613_p1 = por %p612_p9, %p611_p6 }
  0x75   : > { %p609_p10 = pneg %p608_p7 }
  0x76   : > { %p615_p2 = por %p614_p4, %p613_p1 }
  0x78   : > { %p616_p12 = pnand %p615_p2, %p609_p10 }
  0x7a   : > { %619 = shalt.err (!%p616_p12)
}
  0x7b   : > { %s685_s17 = smov 32   ;;  %s686_s30 = smov 2  }
  0x7c   : > { %478 = dma.vmem_to_hbm [thread:$0]  (%p1014_p8), %s929_s19, 128, %s935_s16, %s335_s6, %s685_s17, %s685_s17, %s686_s30  }
  0x7d PF: > { %s365_s3 = sand.u32 1, %s658_s9   ;;  %p1015_p0 = scmp.ne.s32.totalorder %s1003_s20, 0 }
  0x7e   : > { %p1016_p3 = scmp.ge.s32.totalorder %s678_s14, 2  ;;  %s366_s25 = scalar_lea.sflag [#allocation4], %s365_s3 }
  0x80   : > { %p489_p5 = pnand %p1016_p3, %p1015_p0 }
  0x82   : > { %653 = dma.done.wait (!%p489_p5), %s366_s25, 128  }
  0x83   : > { %655 = vsyncadd (!%p489_p5), %s366_s25, 4294967168  ;;  %s19_s14 = sadd.s32 1, %s678_s14   ;;  %s1017_s9 = smov %s662_s10 }
  0x84   : > { %p16_p11 = scmp.ge.s32.totalorder %s19_s14, 4   ;;  %s1018_s10 = smov %s666_s11 }
  0x85   : > { %s1019_s11 = smov %s819_s26  ;;  %s1020_s12 = smov %s674_s13 }
  0x86   : > { %s1021_s13 = smov %s1023_s22  ;;  %18 = sbr.rel (!%p16_p11) target bundleno = 7 (0x7), region = 81 }
  0x8d   :  { %371 = vsyncpa [#allocation3], 1 }
  0x8e   :  { %373 = vsyncpa [#allocation3 + $0x1], 1 }
  0x8f   :  { %374 = vsyncpa [#allocation4], 1 }
  0x90   :  { %376 = vsyncpa [#allocation4 + $0x1], 1 }
  0x91   :  { %377 = vsyncpa [#allocation5], 1 }
  0x92   :  { %379 = vsyncpa [#allocation5 + $0x1], 1 }

</bundles_post_ra>
